<compile_context>
chip_gen: v6e
topology: v6e:2x2x1
jax: 0.10.0
libtpu: 0.0.40
codegen_flags: <defaults>
</compile_context>

<pallas_src>
import jax
import jax.numpy as jnp
from jax.experimental import pallas as pl
from jax.experimental.pallas import tpu as pltpu


def _round_up(n, m):
    return ((n + m - 1) // m) * m


def _device_kind():
    try:
        return jax.devices()[0].device_kind.lower()
    except Exception:
        return ""


_KIND = _device_kind()
# bf16 VPU exists on v6e/v7x; keep the f32 epilogue elsewhere (v5e has no bf16 VALU).
_BF16_EPILOGUE = any(g in _KIND for g in ("v6", "v7"))
# v7x has two TensorCores per chip -> prefer a batch grid of >= 2 "parallel" steps.
_PREFER_SPLIT = "v7" in _KIND


def _pick_tb(batch, tb_max=4096, prefer_split=_PREFER_SPLIT):
    """Pick the batch tile TB (multiple of 128): minimize padded total first,
    then (on dual-TC chips, if there is enough work) prefer grid >= 2, then
    prefer the fewest grid steps (largest TB)."""
    b128 = _round_up(max(batch, 1), 128)
    best = None
    tb = 128
    while tb <= min(max(tb_max, 128), b128):
        bp = _round_up(batch, tb)
        grid = bp // tb
        want_split = prefer_split and b128 >= 256
        key = (bp, 0 if (grid >= 2 or not want_split) else 1, grid)
        if best is None or key < best[0]:
            best = (key, tb, bp)
        tb += 128
    return best[1], best[2]


def _make_dqn_kernel(bf16_epilogue):
    def kernel(xt_ref, w1_ref, b1_ref, w2_ref, b2_ref, w3_ref, b3_ref, ot_ref):
        # xt: [n_obs, TB] bf16 ; w*: [out, in] bf16 ; b*: [out, 1] f32
        xt = xt_ref[...]
        # layer 1 + ReLU:  [H, n_obs] @ [n_obs, TB] -> [H, TB]  (f32 accumulate)
        # TODO(synk): if the MXU push slot is found binding on v6e/v7x, layer 1
        # (K=8) could be re-expressed as 8 VPU rank-1 updates instead of a dot.
        h = jnp.dot(w1_ref[...], xt, preferred_element_type=jnp.float32)
        if bf16_epilogue:
            h = jnp.maximum(h.astype(jnp.bfloat16)
                            + b1_ref[...].astype(jnp.bfloat16), 0.0)
        else:
            h = jnp.maximum(h + b1_ref[...], 0.0).astype(jnp.bfloat16)
        # layer 2 + ReLU:  [H, H] @ [H, TB] -> [H, TB]
        h = jnp.dot(w2_ref[...], h, preferred_element_type=jnp.float32)
        if bf16_epilogue:
            h = jnp.maximum(h.astype(jnp.bfloat16)
                            + b2_ref[...].astype(jnp.bfloat16), 0.0)
        else:
            h = jnp.maximum(h + b2_ref[...], 0.0).astype(jnp.bfloat16)
        # layer 3 (no activation): [A_pad, H] @ [H, TB] -> [A_pad, TB], lane-dense
        out = jnp.dot(w3_ref[...], h, preferred_element_type=jnp.float32)
        ot_ref[...] = (out + b3_ref[...]).astype(ot_ref.dtype)

    return kernel


def prepare_dqn_params(params, a_pad_to=8):
    """One-time conversion of PyTorch-layout params (w: [out, in] f32, b: [out] f32)
    into kernel layout: bf16 weights, f32 [out, 1] biases, W3/b3 zero-padded to
    a_pad_to rows so the output store is unmasked and (8,128)-aligned."""
    w1, b1, w2, b2, w3, b3 = params
    H = w1.shape[0]
    A = w3.shape[0]
    A_pad = _round_up(max(A, a_pad_to), a_pad_to)
    w3p = jnp.zeros((A_pad, H), w3.dtype).at[:A].set(w3)
    b3p = jnp.zeros((A_pad,), b3.dtype).at[:A].set(b3)
    return {
        "w1": w1.astype(jnp.bfloat16), "b1": b1.reshape(H, 1).astype(jnp.float32),
        "w2": w2.astype(jnp.bfloat16), "b2": b2.reshape(H, 1).astype(jnp.float32),
        "w3": w3p.astype(jnp.bfloat16), "b3": b3p.reshape(A_pad, 1).astype(jnp.float32),
        "n_actions": A, "hidden": H, "n_obs": w1.shape[1],
    }


def dqn_forward_t(xt, prepared, *, block_b=None, out_dtype=jnp.float32,
                  bf16_epilogue=None):
    """Transposed-I/O entry point.

    xt: [n_obs, Bp] bf16 with Bp a multiple of 128 (batch on lanes).
    Returns [A_pad, Bp] Q-values (rows >= n_actions are zero-weight padding).
    No host-side pad/transpose/slice — the preferred path for the RL inner loop.
    """
    n_obs, Bp = xt.shape
    H = prepared["hidden"]
    A_pad = prepared["w3"].shape[0]
    assert n_obs == prepared["n_obs"]
    assert Bp % 128 == 0, "batch (lane) dim must be a multiple of 128"
    if bf16_epilogue is None:
        bf16_epilogue = _BF16_EPILOGUE
    if block_b is None:
        block_b, bp_chk = _pick_tb(Bp)
        assert bp_chk == Bp
    assert Bp % block_b == 0

    resident = lambda i: (0, 0)  # weights/biases stay VMEM-resident across steps
    return pl.pallas_call(
        _make_dqn_kernel(bf16_epilogue),
        out_shape=jax.ShapeDtypeStruct((A_pad, Bp), out_dtype),
        grid=(Bp // block_b,),
        in_specs=[
            pl.BlockSpec((n_obs, block_b), lambda i: (0, i)),  # x tile (pipelined)
            pl.BlockSpec((H, n_obs), resident),                # W1
            pl.BlockSpec((H, 1), resident),                    # b1
            pl.BlockSpec((H, H), resident),                    # W2
            pl.BlockSpec((H, 1), resident),                    # b2
            pl.BlockSpec((A_pad, H), resident),                # W3 (rows padded to 8)
            pl.BlockSpec((A_pad, 1), resident),                # b3
        ],
        out_specs=pl.BlockSpec((A_pad, block_b), lambda i: (0, i)),
        compiler_params=pltpu.CompilerParams(
            dimension_semantics=("parallel",),      # dual-TC sharding on v7x
            vmem_limit_bytes=32 * 1024 * 1024),
    )(xt, prepared["w1"], prepared["b1"], prepared["w2"], prepared["b2"],
      prepared["w3"], prepared["b3"])


def dqn_forward(x, prepared, *, tb_max=4096, out_dtype=jnp.float32,
                bf16_epilogue=None):
    """Convenience entry point: x [B, n_obs] f32 -> [B, n_actions].
    Pads/transposes on the host (tiny XLA ops); for the latency-critical
    per-env-step loop prefer dqn_forward_t with [n_obs, 128] activations."""
    B, _ = x.shape
    TB, Bp = _pick_tb(B, tb_max)
    xt = jnp.pad(x, ((0, Bp - B), (0, 0))).T.astype(jnp.bfloat16)   # [n_obs, Bp]
    out_t = dqn_forward_t(xt, prepared, block_b=TB, out_dtype=out_dtype,
                          bf16_epilogue=bf16_epilogue)
    return out_t[:prepared["n_actions"], :B].T


def init_dqn_params(key, n_observations, n_actions, hidden=128):
    """PyTorch nn.Linear default init, PyTorch layout: w [out, in], b [out]."""
    def linear(key, fan_in, fan_out):
        kw, kb = jax.random.split(key)
        bound = 1.0 / jnp.sqrt(fan_in)
        w = jax.random.uniform(kw, (fan_out, fan_in), jnp.float32, -bound, bound)
        b = jax.random.uniform(kb, (fan_out,), jnp.float32, -bound, bound)
        return w, b

    k1, k2, k3 = jax.random.split(key, 3)
    w1, b1 = linear(k1, n_observations, hidden)
    w2, b2 = linear(k2, hidden, hidden)
    w3, b3 = linear(k3, hidden, n_actions)
    return (w1, b1, w2, b2, w3, b3)


def dqn_reference_bf16(x, params, bf16_epilogue=False):
    """Reference mirroring the kernel precision: bf16 operands, f32 MXU
    accumulation, and (optionally) the bf16 bias-add/ReLU epilogue."""
    w1, b1, w2, b2, w3, b3 = params
    bf = jnp.bfloat16

    def hidden(h, w, b):
        y = jnp.dot(h.astype(bf), w.T.astype(bf),
                    preferred_element_type=jnp.float32)
        if bf16_epilogue:
            return jnp.maximum(y.astype(bf) + b.astype(bf), 0.0)
        return jnp.maximum(y + b, 0.0)

    h1 = hidden(x, w1, b1)
    h2 = hidden(h1, w2, b2)
    return jnp.dot(h2.astype(bf), w3.T.astype(bf),
                   preferred_element_type=jnp.float32) + b3


def dqn_reference_f32(x, params):
    """Full-f32 reference (original nn.Module semantics)."""
    w1, b1, w2, b2, w3, b3 = params
    h1 = jnp.maximum(x @ w1.T + b1, 0.0)
    h2 = jnp.maximum(h1 @ w2.T + b2, 0.0)
    return h2 @ w3.T + b3


if __name__ == "__main__":
    # LunarLander-v2: 8 observations, 4 discrete actions.
    n_observations, n_actions = 8, 4

    key = jax.random.PRNGKey(0)
    kx, kp, kx2, kx3 = jax.random.split(key, 4)
    params = init_dqn_params(kp, n_observations, n_actions)
    prepared = prepare_dqn_params(params)        # one-time layout / dtype prep

    # --- small per-step batch (B=2), convenience entry point ---
    x_small = jax.random.normal(kx, (2, n_observations), dtype=jnp.float32)
    out_small = jax.block_until_ready(dqn_forward(x_small, prepared))
    assert out_small.shape == (2, n_actions)
    ref_small = dqn_reference_bf16(x_small, params, bf16_epilogue=_BF16_EPILOGUE)
    assert jnp.allclose(out_small, ref_small, atol=2e-2, rtol=2e-2), \
        "mismatch vs matching-precision reference (B=2)"
    assert jnp.allclose(out_small, dqn_reference_f32(x_small, params),
                        atol=0.1, rtol=0.1), "mismatch vs f32 reference (B=2)"

    # --- transposed fast-path entry ([n_obs, 128] lane-packed batch), bf16 Q-values ---
    x_lane = jax.random.normal(kx3, (128, n_observations), dtype=jnp.float32)
    xt_lane = x_lane.T.astype(jnp.bfloat16)
    qt = jax.block_until_ready(
        dqn_forward_t(xt_lane, prepared, out_dtype=jnp.bfloat16))
    assert qt.shape == (prepared["w3"].shape[0], 128)
    ref_lane = dqn_reference_bf16(xt_lane.T.astype(jnp.float32), params,
                                  bf16_epilogue=_BF16_EPILOGUE)
    assert jnp.allclose(qt[:n_actions].T.astype(jnp.float32), ref_lane,
                        atol=2e-2, rtol=2e-2), "mismatch on transposed fast path"

    # --- large non-multiple-of-tile batch: exercises adaptive TB (1408 here),
    #     grid pipelining, resident weights, and the pad/slice path ---
    x_big = jax.random.normal(kx2, (4099, n_observations), dtype=jnp.float32)
    out_big = jax.block_until_ready(dqn_forward(x_big, prepared))
    assert out_big.shape == (4099, n_actions)
    ref_big = dqn_reference_bf16(x_big, params, bf16_epilogue=_BF16_EPILOGUE)
    assert jnp.allclose(out_big, ref_big, atol=2e-2, rtol=2e-2), \
        "mismatch vs matching-precision reference (B=4099)"

    print("KERNEL_OK")
</pallas_src>

<mosaic_0001>
module attributes {stable_mosaic.version = 11 : i64} {
  func.func @kernel(%arg0: i32, %arg1: memref<8x128xbf16, #tpu.memory_space<vmem>>, %arg2: memref<128x8xbf16, #tpu.memory_space<vmem>>, %arg3: memref<128x1xf32, #tpu.memory_space<vmem>>, %arg4: memref<128x128xbf16, #tpu.memory_space<vmem>>, %arg5: memref<128x1xf32, #tpu.memory_space<vmem>>, %arg6: memref<8x128xbf16, #tpu.memory_space<vmem>>, %arg7: memref<8x1xf32, #tpu.memory_space<vmem>>, %arg8: memref<8x128xf32, #tpu.memory_space<vmem>>) attributes {dimension_semantics = [#tpu.dimension_semantics<parallel>], iteration_bounds = array<i64: 1>, scalar_prefetch = 0 : i64, scratch_operands = 0 : i64, tpu.core_type = #tpu.core_type<tc>, window_params = [{transform_indices = @transform_0, window_bounds = array<i64: 8, 128>}, {pipeline_mode = #tpu.pipeline_mode<synchronous>, transform_indices = @transform_1, window_bounds = array<i64: 128, 8>}, {pipeline_mode = #tpu.pipeline_mode<synchronous>, transform_indices = @transform_2, window_bounds = array<i64: 128, 1>}, {pipeline_mode = #tpu.pipeline_mode<synchronous>, transform_indices = @transform_3, window_bounds = array<i64: 128, 128>}, {pipeline_mode = #tpu.pipeline_mode<synchronous>, transform_indices = @transform_4, window_bounds = array<i64: 128, 1>}, {pipeline_mode = #tpu.pipeline_mode<synchronous>, transform_indices = @transform_5, window_bounds = array<i64: 8, 128>}, {pipeline_mode = #tpu.pipeline_mode<synchronous>, transform_indices = @transform_6, window_bounds = array<i64: 8, 1>}, {transform_indices = @transform_7, window_bounds = array<i64: 8, 128>}]} {
    %c0 = arith.constant 0 : index
    %c0_0 = arith.constant 0 : index
    %0 = vector.load %arg1[%c0, %c0_0] : memref<8x128xbf16, #tpu.memory_space<vmem>>, vector<8x128xbf16>
    %c0_1 = arith.constant 0 : index
    %c0_2 = arith.constant 0 : index
    %1 = vector.load %arg2[%c0_1, %c0_2] : memref<128x8xbf16, #tpu.memory_space<vmem>>, vector<128x8xbf16>
    %cst = arith.constant dense<0.000000e+00> : vector<128x128xf32>
    %2 = tpu.matmul %1, %0, %cst {dimension_numbers = #tpu.dot_dimension_numbers<[1], [0], [0], [1], [0, 0, 1, 1], [], []>} : vector<128x8xbf16>, vector<8x128xbf16>, vector<128x128xf32> -> vector<128x128xf32>
    %c0_3 = arith.constant 0 : index
    %c0_4 = arith.constant 0 : index
    %3 = vector.load %arg3[%c0_3, %c0_4] : memref<128x1xf32, #tpu.memory_space<vmem>>, vector<128x1xf32>
    %4 = vector.broadcast %3 : vector<128x1xf32> to vector<128x128xf32>
    %5 = arith.addf %2, %4 : vector<128x128xf32>
    %cst_5 = arith.constant 0.000000e+00 : f32
    %6 = vector.broadcast %cst_5 : f32 to vector<128x128xf32>
    %7 = arith.maximumf %5, %6 : vector<128x128xf32>
    %8 = arith.truncf %7 : vector<128x128xf32> to vector<128x128xbf16>
    %c0_6 = arith.constant 0 : index
    %c0_7 = arith.constant 0 : index
    %9 = vector.load %arg4[%c0_6, %c0_7] : memref<128x128xbf16, #tpu.memory_space<vmem>>, vector<128x128xbf16>
    %cst_8 = arith.constant dense<0.000000e+00> : vector<128x128xf32>
    %10 = tpu.matmul %9, %8, %cst_8 {dimension_numbers = #tpu.dot_dimension_numbers<[1], [0], [0], [1], [0, 0, 1, 1], [], []>} : vector<128x128xbf16>, vector<128x128xbf16>, vector<128x128xf32> -> vector<128x128xf32>
    %c0_9 = arith.constant 0 : index
    %c0_10 = arith.constant 0 : index
    %11 = vector.load %arg5[%c0_9, %c0_10] : memref<128x1xf32, #tpu.memory_space<vmem>>, vector<128x1xf32>
    %12 = vector.broadcast %11 : vector<128x1xf32> to vector<128x128xf32>
    %13 = arith.addf %10, %12 : vector<128x128xf32>
    %cst_11 = arith.constant 0.000000e+00 : f32
    %14 = vector.broadcast %cst_11 : f32 to vector<128x128xf32>
    %15 = arith.maximumf %13, %14 : vector<128x128xf32>
    %16 = arith.truncf %15 : vector<128x128xf32> to vector<128x128xbf16>
    %c0_12 = arith.constant 0 : index
    %c0_13 = arith.constant 0 : index
    %17 = vector.load %arg6[%c0_12, %c0_13] : memref<8x128xbf16, #tpu.memory_space<vmem>>, vector<8x128xbf16>
    %cst_14 = arith.constant dense<0.000000e+00> : vector<8x128xf32>
    %18 = tpu.matmul %17, %16, %cst_14 {dimension_numbers = #tpu.dot_dimension_numbers<[1], [0], [0], [1], [0, 0, 1, 1], [], []>} : vector<8x128xbf16>, vector<128x128xbf16>, vector<8x128xf32> -> vector<8x128xf32>
    %c0_15 = arith.constant 0 : index
    %c0_16 = arith.constant 0 : index
    %19 = vector.load %arg7[%c0_15, %c0_16] : memref<8x1xf32, #tpu.memory_space<vmem>>, vector<8x1xf32>
    %20 = vector.broadcast %19 : vector<8x1xf32> to vector<8x128xf32>
    %21 = arith.addf %18, %20 : vector<8x128xf32>
    %c0_17 = arith.constant 0 : index
    %c0_18 = arith.constant 0 : index
    %22 = vector.load %arg8[%c0_17, %c0_18] : memref<8x128xf32, #tpu.memory_space<vmem>>, vector<8x128xf32>
    tpu.vector_store %arg8[%c0_17, %c0_18], %21 {strides = array<i32>} : memref<8x128xf32, #tpu.memory_space<vmem>>, vector<8x128xf32>,
    return
  }
  func.func @transform_0(%arg0: i32) -> (i32, i32) {
    %c0_i32 = arith.constant 0 : i32
    %c0_i32_0 = arith.constant 0 : i32
    return %c0_i32, %arg0 : i32, i32
  }
  func.func @transform_1(%arg0: i32) -> (i32, i32) {
    %c0_i32 = arith.constant 0 : i32
    %c0_i32_0 = arith.constant 0 : i32
    %c0_i32_1 = arith.constant 0 : i32
    return %c0_i32, %c0_i32_0 : i32, i32
  }
  func.func @transform_2(%arg0: i32) -> (i32, i32) {
    %c0_i32 = arith.constant 0 : i32
    %c0_i32_0 = arith.constant 0 : i32
    %c0_i32_1 = arith.constant 0 : i32
    return %c0_i32, %c0_i32_0 : i32, i32
  }
  func.func @transform_3(%arg0: i32) -> (i32, i32) {
    %c0_i32 = arith.constant 0 : i32
    %c0_i32_0 = arith.constant 0 : i32
    %c0_i32_1 = arith.constant 0 : i32
    return %c0_i32, %c0_i32_0 : i32, i32
  }
  func.func @transform_4(%arg0: i32) -> (i32, i32) {
    %c0_i32 = arith.constant 0 : i32
    %c0_i32_0 = arith.constant 0 : i32
    %c0_i32_1 = arith.constant 0 : i32
    return %c0_i32, %c0_i32_0 : i32, i32
  }
  func.func @transform_5(%arg0: i32) -> (i32, i32) {
    %c0_i32 = arith.constant 0 : i32
    %c0_i32_0 = arith.constant 0 : i32
    %c0_i32_1 = arith.constant 0 : i32
    return %c0_i32, %c0_i32_0 : i32, i32
  }
  func.func @transform_6(%arg0: i32) -> (i32, i32) {
    %c0_i32 = arith.constant 0 : i32
    %c0_i32_0 = arith.constant 0 : i32
    %c0_i32_1 = arith.constant 0 : i32
    return %c0_i32, %c0_i32_0 : i32, i32
  }
  func.func @transform_7(%arg0: i32) -> (i32, i32) {
    %c0_i32 = arith.constant 0 : i32
    %c0_i32_0 = arith.constant 0 : i32
    return %c0_i32, %arg0 : i32, i32
  }
}

</mosaic_0001>

<bundles_post_ra>
// kernel: tpu_custom_call.1
= control target key start
LH: loop header
LB: loop body
LE: loop exit
PB: predicated region body
PF: predicated region fallthrough
CT: control target
= control target key end

     0   :  { %vm206_vm0 = vcmask 1043456   ;;  %vm181_vm1 = vcmask 64512   ;;  %v847_v5 = vmov 0   ;;  %s1082_s0 = inlined_call_operand.vmem [shape: bf16[8,128], index: 0, kind: input, shape index: {}]   ;;  %s1083_s1 = inlined_call_operand.vmem [shape: bf16[128,8], index: 1, kind: input, shape index: {}]   ;;  %s1084_s2 = inlined_call_operand.vmem [shape: f32[128,1], index: 2, kind: input, shape index: {}]   ;;  %s1085_s3 = inlined_call_operand.vmem [shape: bf16[128,128], index: 3, kind: input, shape index: {}]   ;;  %s1086_s4 = inlined_call_operand.vmem [shape: f32[128,1], index: 4, kind: input, shape index: {}]   ;;  %s1087_s5 = inlined_call_operand.vmem [shape: bf16[8,128], index: 5, kind: input, shape index: {}]   ;;  %s1088_s6 = inlined_call_operand.vmem [shape: f32[8,1], index: 6, kind: input, shape index: {}]   ;;  %s1089_s7 = inlined_call_operand.hbm [shape: f32[8,128], index: 7, kind: output, shape index: {}]  }
   0x1   :  { %v28_v0 = vld [vmem:[%s1082_s0] sm:$0xf]  ;;  %v810_v3 = vld [vmem:[%s1083_s1 + $0x8] sm:$0xff]   ;;  %v811_v4 = vld [vmem:[%s1083_s1 + $0x10] sm:$0xff]   ;;  %807 = vset.pattern.permute.xlu0 %v847_v5  ;;  %808 = vset.pattern.permute.xlu1 %v847_v5 }
   0x2   :  { %v809_v1 = vld [vmem:[%s1083_s1] sm:$0xff]   ;;  %802 = vmatprep.subr.msk.bf16.mxu0 %vm206_vm0, %v28_v0  ;;  %v208_v2 = vsel %vm206_vm0, %v28_v0, 0  ;;  %v59_v6 = vld [vmem:[%s1084_s2 + $0x70] sm:$0xff]  ;;  %v812_v7 = vld [vmem:[%s1083_s1 + $0x18] sm:$0xff]  }
   0x3   :  { %733 = vmatpush3.bf16.msra.mxu0 %v208_v2  ;;  %734 = vmatprep.mubr.msk.bf16.mxu0 %vm181_vm1, %v809_v1  ;;  %v57_v8 = vld [vmem:[%s1084_s2 + $0x60] sm:$0xff]  ;;  %v60_v10 = vld [vmem:[%s1084_s2 + $0x78] sm:$0xff]  ;;  %v58_v11 = vld [vmem:[%s1084_s2 + $0x68] sm:$0xff] }
   0x4   :  { %133 = vperm.xlu0 %807, %v59_v6   ;;  %v813_v9 = vld [vmem:[%s1083_s1 + $0x20] sm:$0xff]   ;;  %123 = vperm.xlu1 %808, %v57_v8   ;;  %v55_v12 = vld [vmem:[%s1084_s2 + $0x50] sm:$0xff]  ;;  %v56_v13 = vld [vmem:[%s1084_s2 + $0x58] sm:$0xff] }
   0x5   :  { %v814_v14 = vld [vmem:[%s1083_s1 + $0x28] sm:$0xff]   ;;  %v815_v15 = vld [vmem:[%s1083_s1 + $0x30] sm:$0xff]   ;;  %v53_v16 = vld [vmem:[%s1084_s2 + $0x40] sm:$0xff] }
   0x6   :  { %735 = vmatmul.mubr.msk.bf16.vlgmr.msra.gmra.mxu0 %vm181_vm1, %v810_v3  ;;  %v54_v17 = vld [vmem:[%s1084_s2 + $0x48] sm:$0xff]  ;;  %v51_v18 = vld [vmem:[%s1084_s2 + $0x30] sm:$0xff]  ;;  %v52_v19 = vld [vmem:[%s1084_s2 + $0x38] sm:$0xff] }
   0x7   :  { %738 = vmatprep.mubr.msk.bf16.mxu0 %vm181_vm1, %v811_v4  ;;  %v816_v20 = vld [vmem:[%s1083_s1 + $0x38] sm:$0xff]  }
   0x8   :  { %138 = vperm.xlu0 %807, %v60_v10   ;;  %128 = vperm.xlu1 %808, %v58_v11  }
   0xc   :  { %113 = vperm.xlu0 %807, %v55_v12   ;;  %118 = vperm.xlu1 %808, %v56_v13  }
   0xe   :  { %739 = vmatmul.mubr.msk.bf16.gmra.mxu0 %vm181_vm1, %v812_v7 }
   0xf   :  { %742 = vmatprep.mubr.msk.bf16.mxu0 %vm181_vm1, %v813_v9 }
  0x10   :  { %103 = vperm.xlu0 %807, %v53_v16   ;;  %108 = vperm.xlu1 %808, %v54_v17  }
  0x14   :  { %93 = vperm.xlu0 %807, %v51_v18  }
  0x16   :  { %743 = vmatmul.mubr.msk.bf16.gmra.mxu0 %vm181_vm1, %v814_v14 }
  0x17   :  { %746 = vmatprep.mubr.msk.bf16.mxu0 %vm181_vm1, %v815_v15 }
  0x18   :  { %12 = vsyncpa [#allocation3], 0  ;;  %v49_v21 = vld [vmem:[%s1084_s2 + $0x20] sm:$0xff]  ;;  %98 = vperm.xlu1 %808, %v52_v19   ;;  %v50_v22 = vld [vmem:[%s1084_s2 + $0x28] sm:$0xff]  ;;  %vm849_vm2 = vmmov 0   ;;  %s850_s22 = smov [#allocation2]  }
  0x19   :  { %83 = vperm.xlu0 %807, %v49_v21   ;;  %v47_v23 = vld [vmem:[%s1084_s2 + $0x10] sm:$0xff]  ;;  %v48_v24 = vld [vmem:[%s1084_s2 + $0x18] sm:$0xff]  ;;  %v45_v25 = vld [vmem:[%s1084_s2] sm:$0xff]  ;;  %s666_s23 = sshll.u32 %s850_s22, 4  ;;  %s667_s23 = int_to_ptr.vmem [resolvable:$true] %s666_s23 }
  0x1a   :  { %v46_v26 = vld [vmem:[%s1084_s2 + $0x8] sm:$0xff]  ;;  %v361_v27 = vld [vmem:[%s1086_s4 + $0x70] sm:$0xff]  ;;  %v362_v28 = vld [vmem:[%s1086_s4 + $0x78] sm:$0xff]  ;;  %s825_s24 = scalar_lea.vmem %s667_s23, 128  ;;  %p830_p1 = scmp.lt.s32.totalorder %s667_s23, %s667_s23 }
  0x1b   :  { %v359_v29 = vld [vmem:[%s1086_s4 + $0x60] sm:$0xff]  ;;  %v360_v30 = vld [vmem:[%s1086_s4 + $0x68] sm:$0xff]  ;;  %v357_v31 = vld [vmem:[%s1086_s4 + $0x50] sm:$0xff]  ;;  %p826_p0 = scmp.ne.s32.totalorder %s667_s23, %s825_s24  ;;  %p831_p2 = scmp.lt.s32.totalorder %s825_s24, %s825_s24 }
  0x1c   :  { %88 = vperm.xlu1 %808, %v50_v22   ;;  %v358_v32 = vld [vmem:[%s1086_s4 + $0x58] sm:$0xff]  ;;  %v355_v33 = vld [vmem:[%s1086_s4 + $0x40] sm:$0xff]  ;;  %v356_v34 = vld [vmem:[%s1086_s4 + $0x48] sm:$0xff] }
  0x1d   :  { %73 = vperm.xlu0 %807, %v47_v23   ;;  %v353_v35 = vld [vmem:[%s1086_s4 + $0x30] sm:$0xff]  ;;  %v354_v36 = vld [vmem:[%s1086_s4 + $0x38] sm:$0xff]  ;;  %v351_v37 = vld [vmem:[%s1086_s4 + $0x20] sm:$0xff]  ;;  %p832_p3 = por %p831_p2, %p830_p1 }
  0x1e   :  { %747 = vmatmul.mubr.msk.bf16.gmra.mxu0 %vm181_vm1, %v816_v20  ;;  %v352_v38 = vld [vmem:[%s1086_s4 + $0x28] sm:$0xff]  ;;  %v349_v39 = vld [vmem:[%s1086_s4 + $0x10] sm:$0xff]  ;;  %v350_v40 = vld [vmem:[%s1086_s4 + $0x18] sm:$0xff] }
  0x1f   :  { %v347_v41 = vld [vmem:[%s1086_s4] sm:$0xff]  ;;  %v348_v42 = vld [vmem:[%s1086_s4 + $0x8] sm:$0xff]  ;;  %p833_p4 = pnand %p832_p3, %p826_p0 }
  0x20   :  { %78 = vperm.xlu1 %808, %v48_v24   ;;  %v613_v43 = vld [vmem:[%s1088_s6] sm:$0xff] }
  0x21   :  { %63 = vperm.xlu0 %807, %v45_v25   ;;  %v817_v44 = vld [vmem:[%s1085_s3] sm:$0xff]  }
  0x22   :  { %766 = vmatprep.mubr.bf16.mxu1 %v817_v44 }
  0x24   :  { %68 = vperm.xlu1 %808, %v46_v26  }
  0x25   :  { %435 = vperm.xlu0 %807, %v361_v27  }
  0x28   :  { %440 = vperm.xlu1 %808, %v362_v28  }
  0x29   :  { %425 = vperm.xlu0 %807, %v359_v29  }
  0x2c   :  { %430 = vperm.xlu1 %808, %v360_v30  }
  0x2d   :  { %415 = vperm.xlu0 %807, %v357_v31  }
  0x30   :  { %420 = vperm.xlu1 %808, %v358_v32  }
  0x31   :  { %405 = vperm.xlu0 %807, %v355_v33  }
  0x34   :  { %410 = vperm.xlu1 %808, %v356_v34  }
  0x35   :  { %395 = vperm.xlu0 %807, %v353_v35  }
  0x38   :  { %400 = vperm.xlu1 %808, %v354_v36  }
  0x39   :  { %385 = vperm.xlu0 %807, %v351_v37  }
  0x3c   :  { %390 = vperm.xlu1 %808, %v352_v38  }
  0x3d   :  { %375 = vperm.xlu0 %807, %v349_v39  }
  0x40   :  { %380 = vperm.xlu1 %808, %v350_v40  }
  0x41   :  { %365 = vperm.xlu0 %807, %v347_v41  }
  0x44   :  { %370 = vperm.xlu1 %808, %v348_v42  }
  0x45   :  { %616 = vperm.xlu0 %807, %v613_v43  }
  0x7f   :  { %v124_v49 = vpop.permute.xlu1 %123  ;;  %v134_v51 = vpop.permute.xlu0 %133 }
  0x83   :  { %v129_v54 = vpop.permute.xlu1 %128  ;;  %v139_v56 = vpop.permute.xlu0 %138 }
  0x87   :  { %v119_v59 = vpop.permute.xlu1 %118  ;;  %v114_v61 = vpop.permute.xlu0 %113 }
  0x8b   :  { %v109_v0 = vpop.permute.xlu1 %108  ;;  %v104_v3 = vpop.permute.xlu0 %103 }
  0x8f   :  { %v94_v17 = vpop.permute.xlu0 %93 }
  0x93   :  { %v99_v12 = vpop.permute.xlu1 %98 }
  0x94   :  { %v84_v27 = vpop.permute.xlu0 %83 }
  0x97   :  { %v89_v23 = vpop.permute.xlu1 %88 }
  0x98   :  { %v74_v36 = vpop.permute.xlu0 %73 }
  0x9b   :  { %v79_v33 = vpop.permute.xlu1 %78 }
  0x9f   :  { %v69_v42 = vpop.permute.xlu1 %68 }
  0xc6   :  { %v1028_v45 = vpop.f32.mrf.mxu0 }
  0xc7   :  { %v253_v40 = vadd.f32 %v1028_v45, %v74_v36  ;;  %v818_v45 = vld [vmem:[%s1085_s3 + $0x8] sm:$0xff]  }
  0xc8   :  { %v1030_v46 = vpop.f32.mrf.mxu0 }
  0xca   :  { %v737_v47 = vpop.f32.mrf.mxu0 }
  0xcb   :  { %v256_v37 = vadd.f32 %v737_v47, %v79_v33 }
  0xcc   :  { %v1032_v48 = vpop.f32.mrf.mxu0 }
  0xcd   :  { %v310_v43 = vmax.f32 %v256_v37, 0.0  ;;  %v248_v44 = vadd.f32 %v1032_v48, %v69_v42  ;;  %v819_v48 = vld [vmem:[%s1085_s3 + $0x10] sm:$0xff]  }
  0xce   :  { %v740_v50 = vpop.f32.mrf.mxu0 }
  0xcf   :  { %v269_v28 = vadd.f32 %v740_v50, %v94_v17  ;;  %v64_v50 = vpop.permute.xlu0 %63  ;;  %v308_v47 = vmax.f32 %v248_v44, 0.0 }
  0xd0   :  { %v260_v52 = vpop.f32.mrf.mxu0 }
  0xd1   :  { %v313_v34 = vmax.f32 %v269_v28, 0.0  ;;  %v261_v35 = vadd.f32 %v260_v52, %v84_v27  ;;  %v245_v52 = vadd.f32 %v1030_v46, %v64_v50  ;;  %v820_v46 = vld [vmem:[%s1085_s3 + $0x18] sm:$0xff]  }
  0xd2   :  { %v741_v53 = vpop.f32.mrf.mxu0 }
  0xd3   :  { %v272_v24 = vadd.f32 %v741_v53, %v99_v12  ;;  %v311_v41 = vmax.f32 %v261_v35, 0.0 }
  0xd4   :  { %v263_v55 = vpop.f32.mrf.mxu0 }
  0xd5   :  { %v314_v30 = vmax.f32 %v272_v24, 0.0  ;;  %v264_v31 = vadd.f32 %v263_v55, %v89_v23 }
  0xd6   :  { %v744_v57 = vpop.f32.mrf.mxu0 }
  0xd7   :  { %v285_v13 = vadd.f32 %v744_v57, %v114_v61  ;;  %v326_v38 = vpack.c.bf16 %v314_v30, %v313_v34  ;;  %v312_v39 = vmax.f32 %v264_v31, 0.0  ;;  %v822_v57 = vld [vmem:[%s1085_s3 + $0x28] sm:$0xff]  }
  0xd8   :  { %v276_v58 = vpop.f32.mrf.mxu0 }
  0xd9   :  { %v317_v21 = vmax.f32 %v285_v13, 0.0  ;;  %v277_v22 = vadd.f32 %v276_v58, %v104_v3  ;;  %v823_v58 = vld [vmem:[%s1085_s3 + $0x30] sm:$0xff]  }
  0xda   :  { %v745_v60 = vpop.f32.mrf.mxu0 }
  0xdb   :  { %v288_v8 = vadd.f32 %v745_v60, %v119_v59  ;;  %v315_v29 = vmax.f32 %v277_v22, 0.0  ;;  %v824_v59 = vld [vmem:[%s1085_s3 + $0x38] sm:$0xff]   ;;  %v848_v60 = vmov 0.0  }
  0xdc   :  { %v279_v62 = vpop.f32.mrf.mxu0  ;;  %782 = vmatprep.subr.bf16.mxu0 %v848_v60  ;;  %798 = vmatprep.mubr.msk.bf16.mxu0 %vm849_vm2, %v848_v60 }
  0xdd   :  { %v318_v18 = vmax.f32 %v288_v8, 0.0  ;;  %v280_v19 = vadd.f32 %v279_v62, %v109_v0 }
  0xde   :  { %v748_v63 = vpop.f32.mrf.mxu0 }
  0xdf   :  { %v301_v2 = vadd.f32 %v748_v63, %v134_v51  ;;  %v328_v25 = vpack.c.bf16 %v318_v18, %v317_v21  ;;  %v316_v26 = vmax.f32 %v280_v19, 0.0  ;;  %v309_v51 = vmax.f32 %v253_v40, 0.0 }
  0xe0   :  { %v292_v1 = vpop.f32.mrf.mxu0 }
  0xe1   :  { %v293_v5 = vadd.f32 %v292_v1, %v124_v49  ;;  %v321_v9 = vmax.f32 %v301_v2, 0.0  ;;  %v327_v32 = vpack.c.bf16 %v316_v26, %v315_v29  ;;  %v325_v49 = vpack.c.bf16 %v312_v39, %v311_v41  ;;  %v441_v2 = vpop.permute.xlu1 %440 }
  0xe2   :  { %v749_v4 = vpop.f32.mrf.mxu0  ;;  %v324_v53 = vpack.c.bf16 %v310_v43, %v309_v51 }
  0xe3   :  { %v304_v6 = vadd.f32 %v749_v4, %v139_v56  ;;  %v319_v14 = vmax.f32 %v293_v5, 0.0  ;;  %v821_v56 = vld [vmem:[%s1085_s3 + $0x20] sm:$0xff]   ;;  %v436_v4 = vpop.permute.xlu0 %435 }
  0xe4   :  { %v295_v7 = vpop.f32.mrf.mxu0 }
  0xe5   :  { %v322_v10 = vmax.f32 %v304_v6, 0.0  ;;  %v296_v11 = vadd.f32 %v295_v7, %v129_v54  ;;  %v307_v54 = vmax.f32 %v245_v52, 0.0  ;;  %v431_v7 = vpop.permute.xlu1 %430 }
  0xe7   :  { %v320_v15 = vmax.f32 %v296_v11, 0.0  ;;  %v330_v16 = vpack.c.bf16 %v322_v10, %v321_v9  ;;  %v323_v55 = vpack.c.bf16 %v308_v47, %v307_v54  ;;  %v426_v9 = vpop.permute.xlu0 %425 }
  0xe9   :  { %v329_v20 = vpack.c.bf16 %v320_v15, %v319_v14  ;;  %750 = vmatprep.subr.bf16.mxu1 %v330_v16  ;;  %v421_v12 = vpop.permute.xlu1 %420 }
  0xea   :  { %751 = vmatpush3.bf16.msra.mxu1 %v330_v16 }
  0xeb   :  { %752 = vmatprep.subr.bf16.mxu1 %v329_v20  ;;  %v416_v14 = vpop.permute.xlu0 %415 }
  0xed   :  { %v411_v18 = vpop.permute.xlu1 %410 }
  0xee   :  { %753 = vmatpush3.bf16.msra.mxu1 %v329_v20 }
  0xef   :  { %754 = vmatprep.subr.bf16.mxu1 %v328_v25  ;;  %v406_v21 = vpop.permute.xlu0 %405 }
  0xf1   :  { %v401_v30 = vpop.permute.xlu1 %400 }
  0xf2   :  { %755 = vmatpush3.bf16.msra.mxu1 %v328_v25 }
  0xf3   :  { %756 = vmatprep.subr.bf16.mxu1 %v327_v32  ;;  %v396_v33 = vpop.permute.xlu0 %395 }
  0xf5   :  { %v391_v39 = vpop.permute.xlu1 %390 }
  0xf6   :  { %757 = vmatpush3.bf16.msra.mxu1 %v327_v32 }
  0xf7   :  { %758 = vmatprep.subr.bf16.mxu1 %v326_v38  ;;  %v386_v43 = vpop.permute.xlu0 %385 }
  0xfa   :  { %759 = vmatpush3.bf16.msra.mxu1 %v326_v38 }
  0xfb   :  { %760 = vmatprep.subr.bf16.mxu1 %v325_v49 }
  0xfe   :  { %761 = vmatpush3.bf16.msra.mxu1 %v325_v49 }
  0xff   :  { %762 = vmatprep.subr.bf16.mxu1 %v324_v53 }
 0x102   :  { %763 = vmatpush3.bf16.msra.mxu1 %v324_v53  ;;  %v381_v53 = vpop.permute.xlu1 %380 }
 0x103   :  { %764 = vmatprep.subr.bf16.mxu1 %v323_v55 }
 0x106   :  { %765 = vmatpush3.bf16.msra.mxu1 %v323_v55  ;;  %v376_v55 = vpop.permute.xlu0 %375 }
 0x109   :  { %767 = vmatmul.mubr.bf16.vlgmr.msra.gmra.mxu1 %v818_v45 }
 0x10a   :  { %770 = vmatprep.mubr.bf16.mxu1 %v819_v48 }
 0x111   :  { %771 = vmatmul.mubr.bf16.gmra.mxu1 %v820_v46 }
 0x112   :  { %774 = vmatprep.mubr.bf16.mxu1 %v821_v56 }
 0x119   :  { %775 = vmatmul.mubr.bf16.gmra.mxu1 %v822_v57 }
 0x11a   :  { %778 = vmatprep.mubr.bf16.mxu1 %v823_v58  ;;  %v371_v58 = vpop.permute.xlu1 %370 }
 0x121   :  { %779 = vmatmul.mubr.bf16.gmra.mxu1 %v824_v59 }
 0x1c9   :  { %v1060_v61 = vpop.f32.mrf.mxu1 }
 0x1ca   :  { %v534_v56 = vadd.f32 %v1060_v61, %v376_v55 }
 0x1cb   :  { %v1062_v62 = vpop.f32.mrf.mxu1 }
 0x1cd   :  { %v769_v63 = vpop.f32.mrf.mxu1 }
 0x1ce   :  { %v537_v45 = vadd.f32 %v769_v63, %v381_v53 }
 0x1cf   :  { %v1064_v0 = vpop.f32.mrf.mxu1 }
 0x1d0   :  { %v591_v59 = vmax.f32 %v537_v45, 0.0 }
 0x1d1   :  { %v772_v1 = vpop.f32.mrf.mxu1 }
 0x1d2   :  { %v550_v44 = vadd.f32 %v772_v1, %v396_v33  ;;  %v529_v1 = vadd.f32 %v1064_v0, %v371_v58  ;;  %v612_v0 = vld [vmem:[%s1087_s5] sm:$0xf] }
 0x1d3   :  { %v541_v3 = vpop.f32.mrf.mxu1 }
 0x1d4   :  { %v594_v47 = vmax.f32 %v550_v44, 0.0  ;;  %v542_v54 = vadd.f32 %v541_v3, %v386_v43  ;;  %v590_v3 = vmax.f32 %v534_v56, 0.0 }
 0x1d5   :  { %v773_v5 = vpop.f32.mrf.mxu1 }
 0x1d6   :  { %v553_v40 = vadd.f32 %v773_v5, %v401_v30  ;;  %v592_v57 = vmax.f32 %v542_v54, 0.0  ;;  %v605_v63 = vpack.c.bf16 %v591_v59, %v590_v3 }
 0x1d7   :  { %v544_v6 = vpop.f32.mrf.mxu1 }
 0x1d8   :  { %v595_v50 = vmax.f32 %v553_v40, 0.0  ;;  %v545_v51 = vadd.f32 %v544_v6, %v391_v39  ;;  %v589_v6 = vmax.f32 %v529_v1, 0.0 }
 0x1d9   :  { %v776_v8 = vpop.f32.mrf.mxu1 }
 0x1da   :  { %v566_v31 = vadd.f32 %v776_v8, %v416_v14  ;;  %v607_v48 = vpack.c.bf16 %v595_v50, %v594_v47  ;;  %v593_v46 = vmax.f32 %v545_v51, 0.0 }
 0x1db   :  { %v557_v10 = vpop.f32.mrf.mxu1 }
 0x1dc   :  { %v598_v37 = vmax.f32 %v566_v31, 0.0  ;;  %v558_v38 = vadd.f32 %v557_v10, %v406_v21 }
 0x1dd   :  { %v777_v11 = vpop.f32.mrf.mxu1 }
 0x1de   :  { %v569_v27 = vadd.f32 %v777_v11, %v421_v12  ;;  %v596_v49 = vmax.f32 %v558_v38, 0.0 }
 0x1df   :  { %v560_v13 = vpop.f32.mrf.mxu1 }
 0x1e0   :  { %v599_v34 = vmax.f32 %v569_v27, 0.0  ;;  %v561_v35 = vadd.f32 %v560_v13, %v411_v18 }
 0x1e1   :  { %v780_v15 = vpop.f32.mrf.mxu1 }
 0x1e2   :  { %v582_v17 = vadd.f32 %v780_v15, %v436_v4  ;;  %v609_v41 = vpack.c.bf16 %v599_v34, %v598_v37  ;;  %v597_v42 = vmax.f32 %v561_v35, 0.0  ;;  %v366_v4 = vpop.permute.xlu0 %365 }
 0x1e3   :  { %v573_v16 = vpop.f32.mrf.mxu1  ;;  %v526_v5 = vadd.f32 %v1062_v62, %v366_v4 }
 0x1e4   :  { %v602_v23 = vmax.f32 %v582_v17, 0.0  ;;  %v574_v24 = vadd.f32 %v573_v16, %v426_v9  ;;  %v608_v52 = vpack.c.bf16 %v597_v42, %v596_v49 }
 0x1e5   :  { %v781_v19 = vpop.f32.mrf.mxu1 }
 0x1e6   :  { %v585_v20 = vadd.f32 %v781_v19, %v441_v2  ;;  %v600_v32 = vmax.f32 %v574_v24, 0.0  ;;  %v606_v2 = vpack.c.bf16 %v593_v46, %v592_v57  ;;  %v617_v8 = vpop.permute.xlu0 %616 }
 0x1e7   :  { %v576_v22 = vpop.f32.mrf.mxu1 }
 0x1e8   :  { %v603_v25 = vmax.f32 %v585_v20, 0.0  ;;  %v577_v26 = vadd.f32 %v576_v22, %v431_v7  ;;  %v588_v7 = vmax.f32 %v526_v5, 0.0 }
 0x1ea   :  { %v611_v28 = vpack.c.bf16 %v603_v25, %v602_v23  ;;  %v601_v29 = vmax.f32 %v577_v26, 0.0  ;;  %v604_v61 = vpack.c.bf16 %v589_v6, %v588_v7 }
 0x1ec   :  { %783 = vmatpush3.bf16.msra.mxu0 %v611_v28  ;;  %v610_v36 = vpack.c.bf16 %v601_v29, %v600_v32 }
 0x1ed   :  { %784 = vmatprep.subr.bf16.mxu0 %v848_v60 }
 0x1f0   :  { %785 = vmatpush3.bf16.msra.mxu0 %v610_v36 }
 0x1f1   :  { %786 = vmatprep.subr.bf16.mxu0 %v848_v60 }
 0x1f4   :  { %787 = vmatpush3.bf16.msra.mxu0 %v609_v41 }
 0x1f5   :  { %788 = vmatprep.subr.bf16.mxu0 %v848_v60 }
 0x1f8   :  { %789 = vmatpush3.bf16.msra.mxu0 %v608_v52 }
 0x1f9   :  { %790 = vmatprep.subr.bf16.mxu0 %v848_v60 }
 0x1fc   :  { %791 = vmatpush3.bf16.msra.mxu0 %v607_v48 }
 0x1fd   :  { %792 = vmatprep.subr.bf16.mxu0 %v848_v60 }
 0x200   :  { %793 = vmatpush3.bf16.msra.mxu0 %v606_v2 }
 0x201   :  { %794 = vmatprep.subr.bf16.mxu0 %v848_v60 }
 0x204   :  { %795 = vmatpush3.bf16.msra.mxu0 %v605_v63 }
 0x205   :  { %796 = vmatprep.subr.bf16.mxu0 %v848_v60 }
 0x208   :  { %797 = vmatpush3.bf16.msra.mxu0 %v604_v61 }
 0x20b   :  { %799 = vmatmul.mubr.bf16.vlgmr.msra.gmra.mxu0 %v612_v0 }
 0x2cb   :  { %v653_v62 = vpop.f32.mrf.mxu0 }
 0x2cc   :  { %v654_v9 = vadd.f32 %v653_v62, %v617_v8 }
 0x2cd   :  { %v800_v10 = vpop.f32.mrf.mxu0 }
 0x2ce   :  { %659 = vst [vmem:[#allocation2] sm:$0xff] %v654_v9 }
 0x2cf   :  { %v656_v11 = vpop.f32.mrf.mxu0 }
 0x2d0   :  { %836 = shalt.err (!%p833_p4)
}
 0x2d1   :  { %669 = dma.vmem_to_hbm [thread:$0]  %s667_s23, 128, %s1089_s7, [#allocation3]   ;;  %v801_v60 = vpop.f32.mrf.mxu0 }
 0x2d2   :  { %845 = dma.done.wait [#allocation3], 128  }
 0x2d3   :  { %846 = vsyncadd [#allocation3], 4294967168 }
 0x2d4   :  { %673 = vsyncpa [#allocation3], 1 }

</bundles_post_ra>
